<compile_context>
chip_gen: v7x
topology: tpu7x:2x2x1
jax: 0.10.0
libtpu: 0.0.40
codegen_flags: <defaults>
</compile_context>

<pallas_src>
import math

import jax
import jax.numpy as jnp
from jax.experimental import pallas as pl
from jax.experimental.pallas import tpu as pltpu

SUBLANE = 8  # vreg sublane height: batch tiles kept a multiple of this


def _round_up(x, m):
    return (x + m - 1) // m * m


def _fc_e_kernel(x_ref, w1_ref, b1_ref, w2_ref, b2_ref, w3_ref, b3_ref, o_ref):
    # One batch tile; all three layers fused (intermediates stay in VMEM/vregs).
    x = x_ref[...].astype(jnp.float32)                       # x.float(); no-op for f32 in
    h = jnp.dot(x, w1_ref[...], preferred_element_type=jnp.float32) + b1_ref[...]
    # drop1: identity (eval mode)
    h = jnp.dot(h, w2_ref[...], preferred_element_type=jnp.float32) + b2_ref[...]
    # drop2: identity (eval mode)
    h = jnp.dot(h, w3_ref[...], preferred_element_type=jnp.float32) + b3_ref[...]
    # drop3: identity (eval mode)
    o_ref[...] = h.astype(o_ref.dtype)                       # narrow (op_dim) f32 store


def fc_e_forward(x, params, *, max_tile_b=4096):
    """Fused fc_e forward (eval mode).

    x:      [B, inp_dim]
    params: w1 [D, D/2], b1 [1, D/2], w2 [D/2, D/4], b2 [1, D/4],
            w3 [D/4, op_dim], b3 [1, op_dim]; weights pre-transposed [in, out], f32.
    Returns [B, op_dim] float32.
    """
    B, D = x.shape
    w1, b1 = params["w1"], params["b1"]
    w2, b2 = params["w2"], params["b2"]
    w3, b3 = params["w3"], params["b3"]
    d2, d4, op_dim = w1.shape[1], w2.shape[1], w3.shape[1]

    # Batch tile: large enough to amortize the ~0.35us per-grid-step overhead
    # and keep the streaming DMAs near the HBM roofline, small enough that
    # v7x's two TensorCores still get >= ~8 grid steps to shard and the
    # double-buffered VMEM footprint stays well inside every generation's
    # budget.  Partial tail tile (B % tb != 0) is handled by Pallas: OOB reads
    # only feed discarded rows, OOB writes are dropped.
    tb = min(max_tile_b, max(SUBLANE, _round_up(pl.cdiv(B, 8), SUBLANE)))
    n_tiles = pl.cdiv(B, tb)

    flops = 2 * B * (D * d2 + d2 * d4 + d4 * op_dim)
    bytes_accessed = (B * D * x.dtype.itemsize
                      + 4 * (w1.size + b1.size + w2.size + b2.size + w3.size + b3.size)
                      + B * op_dim * 4)

    tiled = lambda i: (i, 0)
    resident = lambda i: (0, 0)

    return pl.pallas_call(
        _fc_e_kernel,
        out_shape=jax.ShapeDtypeStruct((B, op_dim), jnp.float32),
        grid=(n_tiles,),
        in_specs=[
            pl.BlockSpec((tb, D), tiled),        # x streams per batch tile
            pl.BlockSpec(w1.shape, resident),    # weights/biases stay VMEM-resident
            pl.BlockSpec(b1.shape, resident),
            pl.BlockSpec(w2.shape, resident),
            pl.BlockSpec(b2.shape, resident),
            pl.BlockSpec(w3.shape, resident),
            pl.BlockSpec(b3.shape, resident),
        ],
        out_specs=pl.BlockSpec((tb, op_dim), tiled),   # true-width output, no padding
        compiler_params=pltpu.CompilerParams(
            dimension_semantics=("parallel",),          # megacore sharding on v7x
            vmem_limit_bytes=32 * 1024 * 1024,
        ),
        cost_estimate=pl.CostEstimate(
            flops=int(flops), transcendentals=0, bytes_accessed=int(bytes_accessed)),
    )(x, w1, b1, w2, b2, w3, b3)


def init_fc_e_params(key, inp_dim, op_dim):
    """Mirror nn.Linear default init (uniform +-1/sqrt(fan_in)).

    Weights stored transposed [in, out] in f32; biases [1, out] in f32.
    """
    dims = [inp_dim, inp_dim // 2, inp_dim // 4, op_dim]
    params = {}
    keys = jax.random.split(key, 6)
    for i in range(3):
        fan_in, fan_out = dims[i], dims[i + 1]
        bound = 1.0 / math.sqrt(fan_in)
        params[f"w{i + 1}"] = jax.random.uniform(
            keys[2 * i], (fan_in, fan_out), minval=-bound, maxval=bound,
            dtype=jnp.float32)
        params[f"b{i + 1}"] = jax.random.uniform(
            keys[2 * i + 1], (1, fan_out), minval=-bound, maxval=bound,
            dtype=jnp.float32)
    return params


if __name__ == "__main__":
    INP_DIM, OP_DIM = 32, 4

    key = jax.random.PRNGKey(0)
    k_x, k_p = jax.random.split(key)
    params = init_fc_e_params(k_p, INP_DIM, OP_DIM)

    def ref_f32(x, p):
        # Module semantics: x.float() -> 3 x (linear, eval-mode dropout).
        h = x.astype(jnp.float32)
        h = jnp.dot(h, p["w1"], precision=jax.lax.Precision.HIGHEST) + p["b1"]
        h = jnp.dot(h, p["w2"], precision=jax.lax.Precision.HIGHEST) + p["b2"]
        h = jnp.dot(h, p["w3"], precision=jax.lax.Precision.HIGHEST) + p["b3"]
        return h

    # B=8: single-tile path.  B=1000: multi-tile grid with a ragged tail tile.
    for B in (8, 1000):
        x = jax.random.normal(jax.random.fold_in(k_x, B), (B, INP_DIM),
                              dtype=jnp.float32)
        out = jax.block_until_ready(fc_e_forward(x, params))
        assert out.shape == (B, OP_DIM)
        ref = ref_f32(x, params)
        assert jnp.allclose(out, ref, atol=2e-2, rtol=2e-2), (
            f"mismatch vs f32 reference (B={B}): "
            f"max abs err {jnp.max(jnp.abs(out - ref))}")

    print("KERNEL_OK")
</pallas_src>

<mosaic_0001>
module attributes {stable_mosaic.version = 11 : i64} {
  func.func @_fc_e_kernel(%arg0: i32, %arg1: memref<8x32xf32, #tpu.memory_space<vmem>>, %arg2: memref<32x16xf32, #tpu.memory_space<vmem>>, %arg3: memref<1x16xf32, #tpu.memory_space<vmem>>, %arg4: memref<16x8xf32, #tpu.memory_space<vmem>>, %arg5: memref<1x8xf32, #tpu.memory_space<vmem>>, %arg6: memref<8x4xf32, #tpu.memory_space<vmem>>, %arg7: memref<1x4xf32, #tpu.memory_space<vmem>>, %arg8: memref<8x4xf32, #tpu.memory_space<vmem>>) attributes {dimension_semantics = [#tpu.dimension_semantics<parallel>], iteration_bounds = array<i64: 1>, scalar_prefetch = 0 : i64, scratch_operands = 0 : i64, tpu.core_type = #tpu.core_type<tc>, window_params = [{transform_indices = @transform_0, window_bounds = array<i64: 8, 32>}, {pipeline_mode = #tpu.pipeline_mode<synchronous>, transform_indices = @transform_1, window_bounds = array<i64: 32, 16>}, {pipeline_mode = #tpu.pipeline_mode<synchronous>, transform_indices = @transform_2, window_bounds = array<i64: 1, 16>}, {pipeline_mode = #tpu.pipeline_mode<synchronous>, transform_indices = @transform_3, window_bounds = array<i64: 16, 8>}, {pipeline_mode = #tpu.pipeline_mode<synchronous>, transform_indices = @transform_4, window_bounds = array<i64: 1, 8>}, {pipeline_mode = #tpu.pipeline_mode<synchronous>, transform_indices = @transform_5, window_bounds = array<i64: 8, 4>}, {pipeline_mode = #tpu.pipeline_mode<synchronous>, transform_indices = @transform_6, window_bounds = array<i64: 1, 4>}, {transform_indices = @transform_7, window_bounds = array<i64: 8, 4>}]} {
    %c0 = arith.constant 0 : index
    %c0_0 = arith.constant 0 : index
    %0 = vector.load %arg1[%c0, %c0_0] : memref<8x32xf32, #tpu.memory_space<vmem>>, vector<8x32xf32>
    %c0_1 = arith.constant 0 : index
    %c0_2 = arith.constant 0 : index
    %1 = vector.load %arg2[%c0_1, %c0_2] : memref<32x16xf32, #tpu.memory_space<vmem>>, vector<32x16xf32>
    %cst = arith.constant dense<0.000000e+00> : vector<8x16xf32>
    %2 = tpu.matmul %0, %1, %cst {dimension_numbers = #tpu.dot_dimension_numbers<[1], [0], [0], [1], [0, 0, 1, 1], [], []>} : vector<8x32xf32>, vector<32x16xf32>, vector<8x16xf32> -> vector<8x16xf32>
    %c0_3 = arith.constant 0 : index
    %c0_4 = arith.constant 0 : index
    %3 = vector.load %arg3[%c0_3, %c0_4] : memref<1x16xf32, #tpu.memory_space<vmem>>, vector<1x16xf32>
    %4 = vector.broadcast %3 : vector<1x16xf32> to vector<8x16xf32>
    %5 = arith.addf %2, %4 : vector<8x16xf32>
    %c0_5 = arith.constant 0 : index
    %c0_6 = arith.constant 0 : index
    %6 = vector.load %arg4[%c0_5, %c0_6] : memref<16x8xf32, #tpu.memory_space<vmem>>, vector<16x8xf32>
    %cst_7 = arith.constant dense<0.000000e+00> : vector<8x8xf32>
    %7 = tpu.matmul %5, %6, %cst_7 {dimension_numbers = #tpu.dot_dimension_numbers<[1], [0], [0], [1], [0, 0, 1, 1], [], []>} : vector<8x16xf32>, vector<16x8xf32>, vector<8x8xf32> -> vector<8x8xf32>
    %c0_8 = arith.constant 0 : index
    %c0_9 = arith.constant 0 : index
    %8 = vector.load %arg5[%c0_8, %c0_9] : memref<1x8xf32, #tpu.memory_space<vmem>>, vector<1x8xf32>
    %9 = vector.broadcast %8 : vector<1x8xf32> to vector<8x8xf32>
    %10 = arith.addf %7, %9 : vector<8x8xf32>
    %c0_10 = arith.constant 0 : index
    %c0_11 = arith.constant 0 : index
    %11 = vector.load %arg6[%c0_10, %c0_11] : memref<8x4xf32, #tpu.memory_space<vmem>>, vector<8x4xf32>
    %cst_12 = arith.constant dense<0.000000e+00> : vector<8x4xf32>
    %12 = tpu.matmul %10, %11, %cst_12 {dimension_numbers = #tpu.dot_dimension_numbers<[1], [0], [0], [1], [0, 0, 1, 1], [], []>} : vector<8x8xf32>, vector<8x4xf32>, vector<8x4xf32> -> vector<8x4xf32>
    %c0_13 = arith.constant 0 : index
    %c0_14 = arith.constant 0 : index
    %13 = vector.load %arg7[%c0_13, %c0_14] : memref<1x4xf32, #tpu.memory_space<vmem>>, vector<1x4xf32>
    %14 = vector.broadcast %13 : vector<1x4xf32> to vector<8x4xf32>
    %15 = arith.addf %12, %14 : vector<8x4xf32>
    %c0_15 = arith.constant 0 : index
    %c0_16 = arith.constant 0 : index
    %16 = vector.load %arg8[%c0_15, %c0_16] : memref<8x4xf32, #tpu.memory_space<vmem>>, vector<8x4xf32>
    tpu.vector_store %arg8[%c0_15, %c0_16], %15 {strides = array<i32>} : memref<8x4xf32, #tpu.memory_space<vmem>>, vector<8x4xf32>,
    return
  }
  func.func @transform_0(%arg0: i32) -> (i32, i32) {
    %c0_i32 = arith.constant 0 : i32
    %c0_i32_0 = arith.constant 0 : i32
    return %arg0, %c0_i32 : i32, i32
  }
  func.func @transform_1(%arg0: i32) -> (i32, i32) {
    %c0_i32 = arith.constant 0 : i32
    %c0_i32_0 = arith.constant 0 : i32
    %c0_i32_1 = arith.constant 0 : i32
    return %c0_i32, %c0_i32_0 : i32, i32
  }
  func.func @transform_2(%arg0: i32) -> (i32, i32) {
    %c0_i32 = arith.constant 0 : i32
    %c0_i32_0 = arith.constant 0 : i32
    %c0_i32_1 = arith.constant 0 : i32
    return %c0_i32, %c0_i32_0 : i32, i32
  }
  func.func @transform_3(%arg0: i32) -> (i32, i32) {
    %c0_i32 = arith.constant 0 : i32
    %c0_i32_0 = arith.constant 0 : i32
    %c0_i32_1 = arith.constant 0 : i32
    return %c0_i32, %c0_i32_0 : i32, i32
  }
  func.func @transform_4(%arg0: i32) -> (i32, i32) {
    %c0_i32 = arith.constant 0 : i32
    %c0_i32_0 = arith.constant 0 : i32
    %c0_i32_1 = arith.constant 0 : i32
    return %c0_i32, %c0_i32_0 : i32, i32
  }
  func.func @transform_5(%arg0: i32) -> (i32, i32) {
    %c0_i32 = arith.constant 0 : i32
    %c0_i32_0 = arith.constant 0 : i32
    %c0_i32_1 = arith.constant 0 : i32
    return %c0_i32, %c0_i32_0 : i32, i32
  }
  func.func @transform_6(%arg0: i32) -> (i32, i32) {
    %c0_i32 = arith.constant 0 : i32
    %c0_i32_0 = arith.constant 0 : i32
    %c0_i32_1 = arith.constant 0 : i32
    return %c0_i32, %c0_i32_0 : i32, i32
  }
  func.func @transform_7(%arg0: i32) -> (i32, i32) {
    %c0_i32 = arith.constant 0 : i32
    %c0_i32_0 = arith.constant 0 : i32
    return %arg0, %c0_i32 : i32, i32
  }
}

</mosaic_0001>

<bundles_post_ra>
// kernel: tpu_custom_call.1
= control target key start
LH: loop header
LB: loop body
LE: loop exit
PB: predicated region body
PF: predicated region fallthrough
CT: control target
= control target key end

     0   :  { %v334_v0 = vmov 0.0|0.0   ;;  %vm335_vm0 = vmmov 0   ;;  %v336_v4 = vmov 0.0   ;;  %vm38_vm1 = vcmask 261120   ;;  %s416_s1 = inlined_call_operand.vmem [shape: f32[32,16], index: 1, kind: input, shape index: {}]   ;;  %s417_s0 = inlined_call_operand.vmem [shape: f32[8,32], index: 0, kind: input, shape index: {}]   ;;  %s418_s3 = inlined_call_operand.vmem [shape: f32[16,8], index: 3, kind: input, shape index: {}]   ;;  %s419_s2 = inlined_call_operand.vmem [shape: f32[1,16], index: 2, kind: input, shape index: {}]   ;;  %s420_s5 = inlined_call_operand.vmem [shape: f32[8,4], index: 5, kind: input, shape index: {}]   ;;  %s421_s4 = inlined_call_operand.vmem [shape: f32[1,8], index: 4, kind: input, shape index: {}]   ;;  %s422_s6 = inlined_call_operand.vmem [shape: f32[1,4], index: 6, kind: input, shape index: {}]   ;;  %s423_s7 = inlined_call_operand.vmem [shape: f32[8,4], index: 7, kind: output, shape index: {}]  }
   0x1   :  { %322 = vmatprep.subr.bf16.mxu0 %v334_v0  ;;  %v27_v1 = vld [vmem:[%s416_s1] sm:$0xff]  ;;  %v28_v2 = vld [vmem:[%s416_s1 + $0x8] sm:$0xff]  ;;  %v29_v3 = vld [vmem:[%s416_s1 + $0x10] sm:$0xff]  ;;  %307 = vmatprep.mubr.msk.f32.mxu0 %vm335_vm0, %v336_v4  ;;  %vm121_vm2 = vcmask 130048   ;;  %vm203_vm3 = vcmask 64512   ;;  %vm277_vm4 = vcmask 31744  }
   0x2   :  { %v323_v5 = vpack.c.bf16 %v28_v2, %v27_v1  ;;  %v30_v6 = vld [vmem:[%s416_s1 + $0x18] sm:$0xff]  ;;  %328 = vmatprep.subr.bf16.mxu1 %v334_v0  ;;  %314 = vmatprep.mubr.msk.f32.mxu1 %vm335_vm0, %v336_v4  ;;  %v26_v8 = vld [vmem:[%s417_s0] sm:$0xff]  ;;  %v113_v10 = vld [vmem:[%s418_s3 + $0x8] sm:$0xff] }
   0x3   :  { %v326_v7 = vpack.c.bf16 %v30_v6, %v29_v3  ;;  %v112_v9 = vld [vmem:[%s418_s3] sm:$0xff] }
   0x4   :  { %324 = vmatpush3.bf16.msra.mxu0 %v323_v5  ;;  %v329_v11 = vpack.c.bf16 %v113_v10, %v112_v9  ;;  %v283_v12 = vld [vmem:[%s419_s2] ss:$0 sm:$0xff] }
   0x5   :  { %325 = vmatprep.subr.bf16.mxu0 %v334_v0  ;;  %v195_v16 = vld [vmem:[%s420_s5] sm:$0xff] }
   0x6   :  { %330 = vmatpush3.bf16.msra.mxu1 %v329_v11  ;;  %v285_v17 = vld [vmem:[%s421_s4] ss:$0 sm:$0xff] }
   0x7   :  { %317 = vmatprep.subr.mxu1 %v336_v4  ;;  %v287_v21 = vld [vmem:[%s422_s6] ss:$0 sm:$0xff] }
   0x8   :  { %327 = vmatpush3.bf16.msra.mxu0 %v326_v7 }
   0xb   :  { %308 = vmatmul.mubr.msk.f32.vlgmr.msra.gmra.mrb[0].mxu0 %vm38_vm1, %v26_v8 }
  0xde   :  { %v108_v13 = vpop.f32.mrb[0].mxu0 }
  0xdf   :  { %v109_v14 = vadd.f32 %v283_v12, %v108_v13  ;;  %v309_v15 = vpop.f32.mrb[1].mxu0 }
  0xe1   :  { %315 = vmatmul.mubr.msk.f32.vlgmr.msra.gmra.mrb[0].mxu1 %vm121_vm2, %v109_v14 }
  0xe2   :  { %318 = vmatpush3.msra.mxu1 %v195_v16  ;;  %319 = vmatprep.mubr.msk.f32.mxu1 %vm335_vm0, %v336_v4 }
 0x1b4   :  { %v191_v18 = vpop.f32.mrb[0].mxu1 }
 0x1b5   :  { %v192_v19 = vadd.f32 %v285_v17, %v191_v18  ;;  %v316_v20 = vpop.f32.mrb[1].mxu1 }
 0x1b7   :  { %320 = vmatmul.mubr.msk.f32.vlgmr.msra.gmra.mrb[2].mxu1 %vm203_vm3, %v192_v19 }
 0x28a   :  { %v273_v22 = vpop.f32.mrb[2].mxu1 }
 0x28b   :  { %v274_v23 = vadd.f32 %v287_v21, %v273_v22  ;;  %v321_v24 = vpop.f32.mrb[3].mxu1 }
 0x28d   :  { %278 = vst.msk [vmem:[%s423_s7] sm:$0xff] %vm277_vm4, %v274_v23 }

</bundles_post_ra>
